<compile_context>
chip_gen: v5e
topology: v5e:2x2
jax: 0.10.0
libtpu: 0.0.40
codegen_flags: <defaults>
</compile_context>

<pallas_src>
import jax
import jax.numpy as jnp
from jax import lax
from jax.experimental import pallas as pl
from jax.experimental.pallas import tpu as pltpu

HIDDEN = 16          # hidden_size from the module
INPUT = 8            # input_size (len(train_item[0].split()) + 1) — small synthetic choice
SEQ = 8              # sequence length


def gru_kernel(x_ref, w_i_ref, b_i_ref, w_h_ref, b_hn_ref,
               fc_w_ref, fc_b_ref, o_ref):
    H = HIDDEN
    x = x_ref[...]                                                   # (SEQ, INPUT)

    # Fused input projection for all three gates [r|z|n], hoisted off the
    # recurrence. r/z hidden biases are h-independent and already folded into
    # b_i; the n-gate hidden bias (b_hn) must stay inside r * (.).
    gi = jnp.dot(x, w_i_ref[...], preferred_element_type=jnp.float32) + b_i_ref[...]  # (SEQ, 3H)

    w_h = w_h_ref[...]                                               # (H, 3H) packed [r|z|n]
    b_hn = b_hn_ref[...]                                             # (1, H)

    # Serial recurrence, fully unrolled (SEQ is a static Python constant).
    # Per step: one MXU dot, one fused sigmoid (r|z), one tanh. Hidden states
    # stay in vregs (no VMEM scratch).
    h = jnp.zeros((1, H), jnp.float32)
    hs_rows = []
    for t in range(SEQ):
        gh = jnp.dot(h, w_h, preferred_element_type=jnp.float32)    # (1, 3H)
        gi_t = gi[t:t + 1, :]                                        # (1, 3H)
        rz = jax.nn.sigmoid(gi_t[:, 0:2 * H] + gh[:, 0:2 * H])       # (1, 2H) — one EUP push
        r = rz[:, 0:H]
        z = rz[:, H:2 * H]
        n = jnp.tanh(gi_t[:, 2 * H:] + r * (gh[:, 2 * H:] + b_hn))
        h = (1.0 - z) * n + z * h
        hs_rows.append(h)

    hs = jnp.concatenate(hs_rows, axis=0)                            # (SEQ, H), register-resident
    # fc1 -> dropout(identity, eval) -> fc2 fused into a single affine map.
    # TODO(synk): nn.Dropout(0.25) is stochastic in train mode; this fusion (and
    # the eval-identity assumption) must be reverted for training.
    o_ref[...] = jnp.dot(hs, fc_w_ref[...],
                         preferred_element_type=jnp.float32) + fc_b_ref[...]


def gru_forward(x, packed_params):
    """x: (SEQ, INPUT) float32 -> (SEQ, 1) float32."""
    args = (x,) + tuple(packed_params)
    vmem = pl.BlockSpec(memory_space=pltpu.MemorySpace.VMEM)
    # Single unbatched sequence -> no grid. TODO(synk): with multiple sequences,
    # batch them into the matmul M dimension / a "parallel" grid axis (needed to
    # use the second TensorCore on v7x).
    return pl.pallas_call(
        gru_kernel,
        out_shape=jax.ShapeDtypeStruct((SEQ, 1), jnp.float32),
        in_specs=[vmem] * len(args),
        out_specs=vmem,
    )(*args)


def init_params(key):
    """Deterministic init with PyTorch nn.GRU / nn.Linear layouts (gate order
    [r, z, n]), then packed host-side into the lane-aligned slabs the kernel
    expects. Returns (packed_params, raw_pytorch_layout_params)."""
    H, I = HIDDEN, INPUT
    ks = jax.random.split(key, 8)
    bound_gru = 1.0 / jnp.sqrt(jnp.float32(H))

    def u(k, shape, bound):
        return jax.random.uniform(k, shape, jnp.float32, -bound, bound)

    # PyTorch layouts.
    w_ih = u(ks[0], (3 * H, I), bound_gru)        # gru.weight_ih_l0
    w_hh = u(ks[1], (3 * H, H), bound_gru)        # gru.weight_hh_l0
    b_ih = u(ks[2], (3 * H,), bound_gru)          # gru.bias_ih_l0
    b_hh = u(ks[3], (3 * H,), bound_gru)          # gru.bias_hh_l0
    b_fc1 = 1.0 / jnp.sqrt(jnp.float32(H))
    fc1_w = u(ks[4], (H // 2, H), b_fc1)          # fc1.weight
    fc1_b = u(ks[5], (H // 2,), b_fc1)            # fc1.bias
    b_fc2 = 1.0 / jnp.sqrt(jnp.float32(H // 2))
    fc2_w = u(ks[6], (1, H // 2), b_fc2)          # fc2.weight
    fc2_b = u(ks[7], (1,), b_fc2)                 # fc2.bias
    raw = (w_ih, w_hh, b_ih, b_hh, fc1_w, fc1_b, fc2_w, fc2_b)

    # --- pack for the kernel ---
    # Transposed for right-multiply; columns land in [r|z|n] order automatically.
    w_i_all = w_ih.T                              # (I, 3H)
    w_h_all = w_hh.T                              # (H, 3H)
    # Fold h-independent hidden biases (r,z) into the input-projection bias;
    # keep the n-gate hidden bias separate (goes inside r * (.)).
    b_i_all = jnp.concatenate(
        [b_ih[:2 * H] + b_hh[:2 * H], b_ih[2 * H:]]).reshape(1, 3 * H)
    b_hn = b_hh[2 * H:].reshape(1, H)
    # Fuse fc1 and fc2 (no nonlinearity between them; dropout identity in eval).
    fc_w = fc1_w.T @ fc2_w.T                                        # (H, 1)
    fc_b = (fc1_b.reshape(1, -1) @ fc2_w.T + fc2_b.reshape(1, 1))   # (1, 1)

    packed = (w_i_all, b_i_all, w_h_all, b_hn, fc_w, fc_b)
    return packed, raw


def gru_reference(x, raw_params):
    """Pure-JAX reference of the PyTorch forward (eval mode), written directly
    from the original PyTorch-layout weights — validates both the kernel and
    the host-side repacking/fusions."""
    w_ih, w_hh, b_ih, b_hh, fc1_w, fc1_b, fc2_w, fc2_b = raw_params
    H = HIDDEN

    def step(h, x_t):
        gi = x_t @ w_ih.T + b_ih                  # (3H,)
        gh = h @ w_hh.T + b_hh                    # (3H,)
        r = jax.nn.sigmoid(gi[0:H] + gh[0:H])
        z = jax.nn.sigmoid(gi[H:2 * H] + gh[H:2 * H])
        n = jnp.tanh(gi[2 * H:] + r * gh[2 * H:])
        h_new = (1.0 - z) * n + z * h
        return h_new, h_new

    _, hs = lax.scan(step, jnp.zeros((H,), jnp.float32), x)
    y = hs @ fc1_w.T + fc1_b                      # fc1
    # dropout: identity in eval mode
    y = y @ fc2_w.T + fc2_b                       # fc2
    return y


if __name__ == "__main__":
    key = jax.random.PRNGKey(0)
    k_param, k_x = jax.random.split(key)
    packed, raw = init_params(k_param)
    x = jax.random.normal(k_x, (SEQ, INPUT), jnp.float32)

    out = gru_forward(x, packed)
    out = jax.block_until_ready(out)

    ref = gru_reference(x, raw)
    assert out.shape == (SEQ, 1)
    assert jnp.allclose(out, ref, atol=1e-5), (out, ref)
    print("KERNEL_OK")
</pallas_src>

<mosaic_0001>
module attributes {stable_mosaic.version = 11 : i64} {
  func.func @gru_kernel(%arg0: memref<8x8xf32, #tpu.memory_space<vmem>>, %arg1: memref<8x48xf32, #tpu.memory_space<vmem>>, %arg2: memref<1x48xf32, #tpu.memory_space<vmem>>, %arg3: memref<16x48xf32, #tpu.memory_space<vmem>>, %arg4: memref<1x16xf32, #tpu.memory_space<vmem>>, %arg5: memref<16x1xf32, #tpu.memory_space<vmem>>, %arg6: memref<1x1xf32, #tpu.memory_space<vmem>>, %arg7: memref<8x1xf32, #tpu.memory_space<vmem>>) attributes {dimension_semantics = [], scalar_prefetch = 0 : i64, scratch_operands = 0 : i64, tpu.core_type = #tpu.core_type<tc>} {
    %c0 = arith.constant 0 : index
    %c0_0 = arith.constant 0 : index
    %0 = vector.load %arg0[%c0, %c0_0] : memref<8x8xf32, #tpu.memory_space<vmem>>, vector<8x8xf32>
    %c0_1 = arith.constant 0 : index
    %c0_2 = arith.constant 0 : index
    %1 = vector.load %arg1[%c0_1, %c0_2] : memref<8x48xf32, #tpu.memory_space<vmem>>, vector<8x48xf32>
    %cst = arith.constant dense<0.000000e+00> : vector<8x48xf32>
    %2 = tpu.matmul %0, %1, %cst {dimension_numbers = #tpu.dot_dimension_numbers<[1], [0], [0], [1], [0, 0, 1, 1], [], []>} : vector<8x8xf32>, vector<8x48xf32>, vector<8x48xf32> -> vector<8x48xf32>
    %c0_3 = arith.constant 0 : index
    %c0_4 = arith.constant 0 : index
    %3 = vector.load %arg2[%c0_3, %c0_4] : memref<1x48xf32, #tpu.memory_space<vmem>>, vector<1x48xf32>
    %4 = vector.broadcast %3 : vector<1x48xf32> to vector<8x48xf32>
    %5 = arith.addf %2, %4 : vector<8x48xf32>
    %c0_5 = arith.constant 0 : index
    %c0_6 = arith.constant 0 : index
    %6 = vector.load %arg3[%c0_5, %c0_6] : memref<16x48xf32, #tpu.memory_space<vmem>>, vector<16x48xf32>
    %c0_7 = arith.constant 0 : index
    %c0_8 = arith.constant 0 : index
    %7 = vector.load %arg4[%c0_7, %c0_8] : memref<1x16xf32, #tpu.memory_space<vmem>>, vector<1x16xf32>
    %cst_9 = arith.constant 0.000000e+00 : f32
    %8 = vector.broadcast %cst_9 : f32 to vector<1x16xf32>
    %cst_10 = arith.constant dense<0.000000e+00> : vector<1x48xf32>
    %9 = tpu.matmul %8, %6, %cst_10 {dimension_numbers = #tpu.dot_dimension_numbers<[1], [0], [0], [1], [0, 0, 1, 1], [], []>} : vector<1x16xf32>, vector<16x48xf32>, vector<1x48xf32> -> vector<1x48xf32>
    %10 = vector.extract_strided_slice %5 {offsets = [0, 0], sizes = [1, 48], strides = [1, 1]} : vector<8x48xf32> to vector<1x48xf32>
    %11 = vector.extract_strided_slice %10 {offsets = [0, 0], sizes = [1, 32], strides = [1, 1]} : vector<1x48xf32> to vector<1x32xf32>
    %12 = vector.extract_strided_slice %9 {offsets = [0, 0], sizes = [1, 32], strides = [1, 1]} : vector<1x48xf32> to vector<1x32xf32>
    %13 = arith.addf %11, %12 : vector<1x32xf32>
    %14 = arith.negf %13 : vector<1x32xf32>
    %15 = math.exp %14 : vector<1x32xf32>
    %cst_11 = arith.constant 1.000000e+00 : f32
    %16 = vector.broadcast %cst_11 : f32 to vector<1x32xf32>
    %17 = arith.addf %16, %15 : vector<1x32xf32>
    %18 = arith.divf %16, %17 : vector<1x32xf32>
    %19 = vector.extract_strided_slice %18 {offsets = [0, 0], sizes = [1, 16], strides = [1, 1]} : vector<1x32xf32> to vector<1x16xf32>
    %20 = vector.extract_strided_slice %18 {offsets = [0, 16], sizes = [1, 16], strides = [1, 1]} : vector<1x32xf32> to vector<1x16xf32>
    %21 = vector.extract_strided_slice %10 {offsets = [0, 32], sizes = [1, 16], strides = [1, 1]} : vector<1x48xf32> to vector<1x16xf32>
    %22 = vector.extract_strided_slice %9 {offsets = [0, 32], sizes = [1, 16], strides = [1, 1]} : vector<1x48xf32> to vector<1x16xf32>
    %23 = arith.addf %22, %7 : vector<1x16xf32>
    %24 = arith.mulf %19, %23 : vector<1x16xf32>
    %25 = arith.addf %21, %24 : vector<1x16xf32>
    %26 = math.tanh %25 : vector<1x16xf32>
    %cst_12 = arith.constant 1.000000e+00 : f32
    %27 = vector.broadcast %cst_12 : f32 to vector<1x16xf32>
    %28 = arith.subf %27, %20 : vector<1x16xf32>
    %29 = arith.mulf %28, %26 : vector<1x16xf32>
    %30 = arith.mulf %20, %8 : vector<1x16xf32>
    %31 = arith.addf %29, %30 : vector<1x16xf32>
    %cst_13 = arith.constant dense<0.000000e+00> : vector<1x48xf32>
    %32 = tpu.matmul %31, %6, %cst_13 {dimension_numbers = #tpu.dot_dimension_numbers<[1], [0], [0], [1], [0, 0, 1, 1], [], []>} : vector<1x16xf32>, vector<16x48xf32>, vector<1x48xf32> -> vector<1x48xf32>
    %33 = vector.extract_strided_slice %5 {offsets = [1, 0], sizes = [1, 48], strides = [1, 1]} : vector<8x48xf32> to vector<1x48xf32>
    %34 = vector.extract_strided_slice %33 {offsets = [0, 0], sizes = [1, 32], strides = [1, 1]} : vector<1x48xf32> to vector<1x32xf32>
    %35 = vector.extract_strided_slice %32 {offsets = [0, 0], sizes = [1, 32], strides = [1, 1]} : vector<1x48xf32> to vector<1x32xf32>
    %36 = arith.addf %34, %35 : vector<1x32xf32>
    %37 = arith.negf %36 : vector<1x32xf32>
    %38 = math.exp %37 : vector<1x32xf32>
    %cst_14 = arith.constant 1.000000e+00 : f32
    %39 = vector.broadcast %cst_14 : f32 to vector<1x32xf32>
    %40 = arith.addf %39, %38 : vector<1x32xf32>
    %41 = arith.divf %39, %40 : vector<1x32xf32>
    %42 = vector.extract_strided_slice %41 {offsets = [0, 0], sizes = [1, 16], strides = [1, 1]} : vector<1x32xf32> to vector<1x16xf32>
    %43 = vector.extract_strided_slice %41 {offsets = [0, 16], sizes = [1, 16], strides = [1, 1]} : vector<1x32xf32> to vector<1x16xf32>
    %44 = vector.extract_strided_slice %33 {offsets = [0, 32], sizes = [1, 16], strides = [1, 1]} : vector<1x48xf32> to vector<1x16xf32>
    %45 = vector.extract_strided_slice %32 {offsets = [0, 32], sizes = [1, 16], strides = [1, 1]} : vector<1x48xf32> to vector<1x16xf32>
    %46 = arith.addf %45, %7 : vector<1x16xf32>
    %47 = arith.mulf %42, %46 : vector<1x16xf32>
    %48 = arith.addf %44, %47 : vector<1x16xf32>
    %49 = math.tanh %48 : vector<1x16xf32>
    %cst_15 = arith.constant 1.000000e+00 : f32
    %50 = vector.broadcast %cst_15 : f32 to vector<1x16xf32>
    %51 = arith.subf %50, %43 : vector<1x16xf32>
    %52 = arith.mulf %51, %49 : vector<1x16xf32>
    %53 = arith.mulf %43, %31 : vector<1x16xf32>
    %54 = arith.addf %52, %53 : vector<1x16xf32>
    %cst_16 = arith.constant dense<0.000000e+00> : vector<1x48xf32>
    %55 = tpu.matmul %54, %6, %cst_16 {dimension_numbers = #tpu.dot_dimension_numbers<[1], [0], [0], [1], [0, 0, 1, 1], [], []>} : vector<1x16xf32>, vector<16x48xf32>, vector<1x48xf32> -> vector<1x48xf32>
    %56 = vector.extract_strided_slice %5 {offsets = [2, 0], sizes = [1, 48], strides = [1, 1]} : vector<8x48xf32> to vector<1x48xf32>
    %57 = vector.extract_strided_slice %56 {offsets = [0, 0], sizes = [1, 32], strides = [1, 1]} : vector<1x48xf32> to vector<1x32xf32>
    %58 = vector.extract_strided_slice %55 {offsets = [0, 0], sizes = [1, 32], strides = [1, 1]} : vector<1x48xf32> to vector<1x32xf32>
    %59 = arith.addf %57, %58 : vector<1x32xf32>
    %60 = arith.negf %59 : vector<1x32xf32>
    %61 = math.exp %60 : vector<1x32xf32>
    %cst_17 = arith.constant 1.000000e+00 : f32
    %62 = vector.broadcast %cst_17 : f32 to vector<1x32xf32>
    %63 = arith.addf %62, %61 : vector<1x32xf32>
    %64 = arith.divf %62, %63 : vector<1x32xf32>
    %65 = vector.extract_strided_slice %64 {offsets = [0, 0], sizes = [1, 16], strides = [1, 1]} : vector<1x32xf32> to vector<1x16xf32>
    %66 = vector.extract_strided_slice %64 {offsets = [0, 16], sizes = [1, 16], strides = [1, 1]} : vector<1x32xf32> to vector<1x16xf32>
    %67 = vector.extract_strided_slice %56 {offsets = [0, 32], sizes = [1, 16], strides = [1, 1]} : vector<1x48xf32> to vector<1x16xf32>
    %68 = vector.extract_strided_slice %55 {offsets = [0, 32], sizes = [1, 16], strides = [1, 1]} : vector<1x48xf32> to vector<1x16xf32>
    %69 = arith.addf %68, %7 : vector<1x16xf32>
    %70 = arith.mulf %65, %69 : vector<1x16xf32>
    %71 = arith.addf %67, %70 : vector<1x16xf32>
    %72 = math.tanh %71 : vector<1x16xf32>
    %cst_18 = arith.constant 1.000000e+00 : f32
    %73 = vector.broadcast %cst_18 : f32 to vector<1x16xf32>
    %74 = arith.subf %73, %66 : vector<1x16xf32>
    %75 = arith.mulf %74, %72 : vector<1x16xf32>
    %76 = arith.mulf %66, %54 : vector<1x16xf32>
    %77 = arith.addf %75, %76 : vector<1x16xf32>
    %cst_19 = arith.constant dense<0.000000e+00> : vector<1x48xf32>
    %78 = tpu.matmul %77, %6, %cst_19 {dimension_numbers = #tpu.dot_dimension_numbers<[1], [0], [0], [1], [0, 0, 1, 1], [], []>} : vector<1x16xf32>, vector<16x48xf32>, vector<1x48xf32> -> vector<1x48xf32>
    %79 = vector.extract_strided_slice %5 {offsets = [3, 0], sizes = [1, 48], strides = [1, 1]} : vector<8x48xf32> to vector<1x48xf32>
    %80 = vector.extract_strided_slice %79 {offsets = [0, 0], sizes = [1, 32], strides = [1, 1]} : vector<1x48xf32> to vector<1x32xf32>
    %81 = vector.extract_strided_slice %78 {offsets = [0, 0], sizes = [1, 32], strides = [1, 1]} : vector<1x48xf32> to vector<1x32xf32>
    %82 = arith.addf %80, %81 : vector<1x32xf32>
    %83 = arith.negf %82 : vector<1x32xf32>
    %84 = math.exp %83 : vector<1x32xf32>
    %cst_20 = arith.constant 1.000000e+00 : f32
    %85 = vector.broadcast %cst_20 : f32 to vector<1x32xf32>
    %86 = arith.addf %85, %84 : vector<1x32xf32>
    %87 = arith.divf %85, %86 : vector<1x32xf32>
    %88 = vector.extract_strided_slice %87 {offsets = [0, 0], sizes = [1, 16], strides = [1, 1]} : vector<1x32xf32> to vector<1x16xf32>
    %89 = vector.extract_strided_slice %87 {offsets = [0, 16], sizes = [1, 16], strides = [1, 1]} : vector<1x32xf32> to vector<1x16xf32>
    %90 = vector.extract_strided_slice %79 {offsets = [0, 32], sizes = [1, 16], strides = [1, 1]} : vector<1x48xf32> to vector<1x16xf32>
    %91 = vector.extract_strided_slice %78 {offsets = [0, 32], sizes = [1, 16], strides = [1, 1]} : vector<1x48xf32> to vector<1x16xf32>
    %92 = arith.addf %91, %7 : vector<1x16xf32>
    %93 = arith.mulf %88, %92 : vector<1x16xf32>
    %94 = arith.addf %90, %93 : vector<1x16xf32>
    %95 = math.tanh %94 : vector<1x16xf32>
    %cst_21 = arith.constant 1.000000e+00 : f32
    %96 = vector.broadcast %cst_21 : f32 to vector<1x16xf32>
    %97 = arith.subf %96, %89 : vector<1x16xf32>
    %98 = arith.mulf %97, %95 : vector<1x16xf32>
    %99 = arith.mulf %89, %77 : vector<1x16xf32>
    %100 = arith.addf %98, %99 : vector<1x16xf32>
    %cst_22 = arith.constant dense<0.000000e+00> : vector<1x48xf32>
    %101 = tpu.matmul %100, %6, %cst_22 {dimension_numbers = #tpu.dot_dimension_numbers<[1], [0], [0], [1], [0, 0, 1, 1], [], []>} : vector<1x16xf32>, vector<16x48xf32>, vector<1x48xf32> -> vector<1x48xf32>
    %102 = vector.extract_strided_slice %5 {offsets = [4, 0], sizes = [1, 48], strides = [1, 1]} : vector<8x48xf32> to vector<1x48xf32>
    %103 = vector.extract_strided_slice %102 {offsets = [0, 0], sizes = [1, 32], strides = [1, 1]} : vector<1x48xf32> to vector<1x32xf32>
    %104 = vector.extract_strided_slice %101 {offsets = [0, 0], sizes = [1, 32], strides = [1, 1]} : vector<1x48xf32> to vector<1x32xf32>
    %105 = arith.addf %103, %104 : vector<1x32xf32>
    %106 = arith.negf %105 : vector<1x32xf32>
    %107 = math.exp %106 : vector<1x32xf32>
    %cst_23 = arith.constant 1.000000e+00 : f32
    %108 = vector.broadcast %cst_23 : f32 to vector<1x32xf32>
    %109 = arith.addf %108, %107 : vector<1x32xf32>
    %110 = arith.divf %108, %109 : vector<1x32xf32>
    %111 = vector.extract_strided_slice %110 {offsets = [0, 0], sizes = [1, 16], strides = [1, 1]} : vector<1x32xf32> to vector<1x16xf32>
    %112 = vector.extract_strided_slice %110 {offsets = [0, 16], sizes = [1, 16], strides = [1, 1]} : vector<1x32xf32> to vector<1x16xf32>
    %113 = vector.extract_strided_slice %102 {offsets = [0, 32], sizes = [1, 16], strides = [1, 1]} : vector<1x48xf32> to vector<1x16xf32>
    %114 = vector.extract_strided_slice %101 {offsets = [0, 32], sizes = [1, 16], strides = [1, 1]} : vector<1x48xf32> to vector<1x16xf32>
    %115 = arith.addf %114, %7 : vector<1x16xf32>
    %116 = arith.mulf %111, %115 : vector<1x16xf32>
    %117 = arith.addf %113, %116 : vector<1x16xf32>
    %118 = math.tanh %117 : vector<1x16xf32>
    %cst_24 = arith.constant 1.000000e+00 : f32
    %119 = vector.broadcast %cst_24 : f32 to vector<1x16xf32>
    %120 = arith.subf %119, %112 : vector<1x16xf32>
    %121 = arith.mulf %120, %118 : vector<1x16xf32>
    %122 = arith.mulf %112, %100 : vector<1x16xf32>
    %123 = arith.addf %121, %122 : vector<1x16xf32>
    %cst_25 = arith.constant dense<0.000000e+00> : vector<1x48xf32>
    %124 = tpu.matmul %123, %6, %cst_25 {dimension_numbers = #tpu.dot_dimension_numbers<[1], [0], [0], [1], [0, 0, 1, 1], [], []>} : vector<1x16xf32>, vector<16x48xf32>, vector<1x48xf32> -> vector<1x48xf32>
    %125 = vector.extract_strided_slice %5 {offsets = [5, 0], sizes = [1, 48], strides = [1, 1]} : vector<8x48xf32> to vector<1x48xf32>
    %126 = vector.extract_strided_slice %125 {offsets = [0, 0], sizes = [1, 32], strides = [1, 1]} : vector<1x48xf32> to vector<1x32xf32>
    %127 = vector.extract_strided_slice %124 {offsets = [0, 0], sizes = [1, 32], strides = [1, 1]} : vector<1x48xf32> to vector<1x32xf32>
    %128 = arith.addf %126, %127 : vector<1x32xf32>
    %129 = arith.negf %128 : vector<1x32xf32>
    %130 = math.exp %129 : vector<1x32xf32>
    %cst_26 = arith.constant 1.000000e+00 : f32
    %131 = vector.broadcast %cst_26 : f32 to vector<1x32xf32>
    %132 = arith.addf %131, %130 : vector<1x32xf32>
    %133 = arith.divf %131, %132 : vector<1x32xf32>
    %134 = vector.extract_strided_slice %133 {offsets = [0, 0], sizes = [1, 16], strides = [1, 1]} : vector<1x32xf32> to vector<1x16xf32>
    %135 = vector.extract_strided_slice %133 {offsets = [0, 16], sizes = [1, 16], strides = [1, 1]} : vector<1x32xf32> to vector<1x16xf32>
    %136 = vector.extract_strided_slice %125 {offsets = [0, 32], sizes = [1, 16], strides = [1, 1]} : vector<1x48xf32> to vector<1x16xf32>
    %137 = vector.extract_strided_slice %124 {offsets = [0, 32], sizes = [1, 16], strides = [1, 1]} : vector<1x48xf32> to vector<1x16xf32>
    %138 = arith.addf %137, %7 : vector<1x16xf32>
    %139 = arith.mulf %134, %138 : vector<1x16xf32>
    %140 = arith.addf %136, %139 : vector<1x16xf32>
    %141 = math.tanh %140 : vector<1x16xf32>
    %cst_27 = arith.constant 1.000000e+00 : f32
    %142 = vector.broadcast %cst_27 : f32 to vector<1x16xf32>
    %143 = arith.subf %142, %135 : vector<1x16xf32>
    %144 = arith.mulf %143, %141 : vector<1x16xf32>
    %145 = arith.mulf %135, %123 : vector<1x16xf32>
    %146 = arith.addf %144, %145 : vector<1x16xf32>
    %cst_28 = arith.constant dense<0.000000e+00> : vector<1x48xf32>
    %147 = tpu.matmul %146, %6, %cst_28 {dimension_numbers = #tpu.dot_dimension_numbers<[1], [0], [0], [1], [0, 0, 1, 1], [], []>} : vector<1x16xf32>, vector<16x48xf32>, vector<1x48xf32> -> vector<1x48xf32>
    %148 = vector.extract_strided_slice %5 {offsets = [6, 0], sizes = [1, 48], strides = [1, 1]} : vector<8x48xf32> to vector<1x48xf32>
    %149 = vector.extract_strided_slice %148 {offsets = [0, 0], sizes = [1, 32], strides = [1, 1]} : vector<1x48xf32> to vector<1x32xf32>
    %150 = vector.extract_strided_slice %147 {offsets = [0, 0], sizes = [1, 32], strides = [1, 1]} : vector<1x48xf32> to vector<1x32xf32>
    %151 = arith.addf %149, %150 : vector<1x32xf32>
    %152 = arith.negf %151 : vector<1x32xf32>
    %153 = math.exp %152 : vector<1x32xf32>
    %cst_29 = arith.constant 1.000000e+00 : f32
    %154 = vector.broadcast %cst_29 : f32 to vector<1x32xf32>
    %155 = arith.addf %154, %153 : vector<1x32xf32>
    %156 = arith.divf %154, %155 : vector<1x32xf32>
    %157 = vector.extract_strided_slice %156 {offsets = [0, 0], sizes = [1, 16], strides = [1, 1]} : vector<1x32xf32> to vector<1x16xf32>
    %158 = vector.extract_strided_slice %156 {offsets = [0, 16], sizes = [1, 16], strides = [1, 1]} : vector<1x32xf32> to vector<1x16xf32>
    %159 = vector.extract_strided_slice %148 {offsets = [0, 32], sizes = [1, 16], strides = [1, 1]} : vector<1x48xf32> to vector<1x16xf32>
    %160 = vector.extract_strided_slice %147 {offsets = [0, 32], sizes = [1, 16], strides = [1, 1]} : vector<1x48xf32> to vector<1x16xf32>
    %161 = arith.addf %160, %7 : vector<1x16xf32>
    %162 = arith.mulf %157, %161 : vector<1x16xf32>
    %163 = arith.addf %159, %162 : vector<1x16xf32>
    %164 = math.tanh %163 : vector<1x16xf32>
    %cst_30 = arith.constant 1.000000e+00 : f32
    %165 = vector.broadcast %cst_30 : f32 to vector<1x16xf32>
    %166 = arith.subf %165, %158 : vector<1x16xf32>
    %167 = arith.mulf %166, %164 : vector<1x16xf32>
    %168 = arith.mulf %158, %146 : vector<1x16xf32>
    %169 = arith.addf %167, %168 : vector<1x16xf32>
    %cst_31 = arith.constant dense<0.000000e+00> : vector<1x48xf32>
    %170 = tpu.matmul %169, %6, %cst_31 {dimension_numbers = #tpu.dot_dimension_numbers<[1], [0], [0], [1], [0, 0, 1, 1], [], []>} : vector<1x16xf32>, vector<16x48xf32>, vector<1x48xf32> -> vector<1x48xf32>
    %171 = vector.extract_strided_slice %5 {offsets = [7, 0], sizes = [1, 48], strides = [1, 1]} : vector<8x48xf32> to vector<1x48xf32>
    %172 = vector.extract_strided_slice %171 {offsets = [0, 0], sizes = [1, 32], strides = [1, 1]} : vector<1x48xf32> to vector<1x32xf32>
    %173 = vector.extract_strided_slice %170 {offsets = [0, 0], sizes = [1, 32], strides = [1, 1]} : vector<1x48xf32> to vector<1x32xf32>
    %174 = arith.addf %172, %173 : vector<1x32xf32>
    %175 = arith.negf %174 : vector<1x32xf32>
    %176 = math.exp %175 : vector<1x32xf32>
    %cst_32 = arith.constant 1.000000e+00 : f32
    %177 = vector.broadcast %cst_32 : f32 to vector<1x32xf32>
    %178 = arith.addf %177, %176 : vector<1x32xf32>
    %179 = arith.divf %177, %178 : vector<1x32xf32>
    %180 = vector.extract_strided_slice %179 {offsets = [0, 0], sizes = [1, 16], strides = [1, 1]} : vector<1x32xf32> to vector<1x16xf32>
    %181 = vector.extract_strided_slice %179 {offsets = [0, 16], sizes = [1, 16], strides = [1, 1]} : vector<1x32xf32> to vector<1x16xf32>
    %182 = vector.extract_strided_slice %171 {offsets = [0, 32], sizes = [1, 16], strides = [1, 1]} : vector<1x48xf32> to vector<1x16xf32>
    %183 = vector.extract_strided_slice %170 {offsets = [0, 32], sizes = [1, 16], strides = [1, 1]} : vector<1x48xf32> to vector<1x16xf32>
    %184 = arith.addf %183, %7 : vector<1x16xf32>
    %185 = arith.mulf %180, %184 : vector<1x16xf32>
    %186 = arith.addf %182, %185 : vector<1x16xf32>
    %187 = math.tanh %186 : vector<1x16xf32>
    %cst_33 = arith.constant 1.000000e+00 : f32
    %188 = vector.broadcast %cst_33 : f32 to vector<1x16xf32>
    %189 = arith.subf %188, %181 : vector<1x16xf32>
    %190 = arith.mulf %189, %187 : vector<1x16xf32>
    %191 = arith.mulf %181, %169 : vector<1x16xf32>
    %192 = arith.addf %190, %191 : vector<1x16xf32>
    %193 = tpu.concatenate %31, %54, %77, %100, %123, %146, %169, %192 in 0 : vector<1x16xf32>, vector<1x16xf32>, vector<1x16xf32>, vector<1x16xf32>, vector<1x16xf32>, vector<1x16xf32>, vector<1x16xf32>, vector<1x16xf32> -> vector<8x16xf32>
    %c0_34 = arith.constant 0 : index
    %c0_35 = arith.constant 0 : index
    %194 = vector.load %arg5[%c0_34, %c0_35] : memref<16x1xf32, #tpu.memory_space<vmem>>, vector<16x1xf32>
    %cst_36 = arith.constant dense<0.000000e+00> : vector<8x1xf32>
    %195 = tpu.matmul %193, %194, %cst_36 {dimension_numbers = #tpu.dot_dimension_numbers<[1], [0], [0], [1], [0, 0, 1, 1], [], []>} : vector<8x16xf32>, vector<16x1xf32>, vector<8x1xf32> -> vector<8x1xf32>
    %c0_37 = arith.constant 0 : index
    %c0_38 = arith.constant 0 : index
    %196 = vector.load %arg6[%c0_37, %c0_38] : memref<1x1xf32, #tpu.memory_space<vmem>>, vector<1x1xf32>
    %197 = vector.broadcast %196 : vector<1x1xf32> to vector<8x1xf32>
    %198 = arith.addf %195, %197 : vector<8x1xf32>
    %c0_39 = arith.constant 0 : index
    %c0_40 = arith.constant 0 : index
    %199 = vector.load %arg7[%c0_39, %c0_40] : memref<8x1xf32, #tpu.memory_space<vmem>>, vector<8x1xf32>
    tpu.vector_store %arg7[%c0_39, %c0_40], %198 {strides = array<i32>} : memref<8x1xf32, #tpu.memory_space<vmem>>, vector<8x1xf32>,
    return
  }
}

</mosaic_0001>

<bundles_post_ra>
// kernel: tpu_custom_call.1
= control target key start
LH: loop header
LB: loop body
LE: loop exit
PB: predicated region body
PF: predicated region fallthrough
CT: control target
= control target key end

     0   :  { %s990_s0 = inlined_call_operand.hbm [shape: f32[8,8], index: 0, kind: input, shape index: {}]   ;;  %s991_s1 = inlined_call_operand.hbm [shape: f32[8,48], index: 1, kind: input, shape index: {}]   ;;  %s992_s2 = inlined_call_operand.vmem [shape: f32[1,48], index: 2, kind: input, shape index: {}]   ;;  %s993_s3 = inlined_call_operand.vmem [shape: f32[16,48], index: 3, kind: input, shape index: {}]   ;;  %s994_s4 = inlined_call_operand.vmem [shape: f32[1,16], index: 4, kind: input, shape index: {}]   ;;  %s995_s5 = inlined_call_operand.vmem [shape: f32[16,1], index: 5, kind: input, shape index: {}]   ;;  %s996_s6 = inlined_call_operand.<no memory space> [shape: f32[1,1], index: 6, kind: input, shape index: {}]   ;;  %s997_s7 = inlined_call_operand.vmem [shape: f32[8,1], index: 7, kind: output, shape index: {}]  }
   0x1   :  { %v12_v0 = vstv %s996_s6 }
   0x2   :  { %13 = vst [vmem:[#allocation2] sm:$0x1] %v12_v0 }
   0x3   :  { %14 = vsyncpa [#allocation4], 0  ;;  %s21_s28 = sshll.u32 %s990_s0, 4  ;;  %s22_s28 = int_to_ptr.hbm [resolvable:$true] %s21_s28 }
   0x4   :  { %15 = vsyncpa [#allocation6], 0  ;;  %s840_s29 = smov [#allocation3]   ;;  %s32_s10 = sshll.u32 %s991_s1, 4  ;;  %s33_s10 = int_to_ptr.hbm [resolvable:$true] %s32_s10 }
   0x5   :  { %s23_s30 = sshll.u32 %s840_s29, 4  ;;  %s841_s11 = smov [#allocation5]   ;;  %s24_s30 = int_to_ptr.vmem [resolvable:$true] %s23_s30 }
   0x6   :  { %26 = dma.hbm_to_vmem [thread:$0]  %s22_s28, 128, %s24_s30, [#allocation4]  }
   0x7   :  { %s34_s12 = sshll.u32 %s841_s11, 4  ;;  %s35_s12 = int_to_ptr.vmem [resolvable:$true] %s34_s12 }
   0x8   :  { %37 = dma.hbm_to_vmem [thread:$0]  %s33_s10, 128, %s35_s12, [#allocation6]  }
   0x9   :  { %836 = dma.done.wait [#allocation4], 128  }
   0xa   :  { %837 = vsyncadd [#allocation4], 4294967168 }
   0xb   :  { %838 = dma.done.wait [#allocation6], 128  }
   0xc   :  { %839 = vsyncadd [#allocation6], 4294967168  ;;  %vm62_vm0 = vcmask 64512   ;;  %v57_v1 = vld [vmem:[#allocation5] sm:$0xff]  ;;  %v56_v3 = vld [vmem:[#allocation3] sm:$0xff]  ;;  %s842_s16 = smov 32  }
   0xd   :  { %v87_v2 = vld [vmem:[%s993_s3 + $0x8] sm:$0xff]  ;;  %81 = vmatpush.msra.mxu0 %v57_v1  ;;  %v86_v4 = vld [vmem:[%s993_s3] sm:$0xff]  ;;  %v843_v6 = vmov 0.0   ;;  %s844_s3 = smov 96   ;;  %vm89_vm5 = vcmask 130048   ;;  %vm661_vm14 = vcmask 1040384  }
   0xe   :  { %107 = vmatpush.msra.mxu1 %v87_v2  ;;  %v737_v5 = vld [vmem:[%s994_s4] ss:$0 sm:$0xff]  ;;  %714 = vmatmul.msk.f32.vlgmr.msra.gmra.mxu0 %vm62_vm0, %v56_v3  ;;  %vm663_vm15 = vcmask 1041408  }
   0xf   :  { %177 = vmatpush.msra.mxu2 %v87_v2  ;;  %135 = vrot.lane.b32.xlu0 %v737_v5, %s842_s16  ;;  %v738_v10 = vld [vmem:[%s992_s2] ss:$0 sm:$0xff]  ;;  %s845_s2 = smov 112  }
  0x10   :  { %108 = vmatpush.msra.mxu1 %v86_v4  ;;  %249 = vmatpush.msra.mxu3 %v87_v2 }
  0x11   :  { %109 = vmatmul.f32.vlgmr.msra.gmra.mxu1 %v843_v6  ;;  %178 = vmatpush.msra.mxu2 %v86_v4 }
  0x12   :  { %321 = vmatpush.msrb.mxu0 %v87_v2  ;;  %393 = vmatpush.msrb.mxu1 %v87_v2 }
  0x13   :  { %465 = vmatpush.msrb.mxu2 %v87_v2  ;;  %250 = vmatpush.msra.mxu3 %v86_v4 }
  0x14   :  { %322 = vmatpush.msrb.mxu0 %v86_v4  ;;  %394 = vmatpush.msrb.mxu1 %v86_v4 }
  0x15   :  { %466 = vmatpush.msrb.mxu2 %v86_v4  ;;  %537 = vmatpush.msrb.mxu3 %v87_v2 }
  0x16   :  { %609 = vmatpush.msra.mxu0 %v87_v2 }
  0x17   :  { %538 = vmatpush.msrb.mxu3 %v86_v4 }
  0x18   :  { %610 = vmatpush.msra.mxu0 %v86_v4 }
  0x81   :  { %v905_v7 = vpop.permute.xlu0 %135 }
  0x8b   :  { %v83_v11 = vpop.f32.mrf.mxu0 }
  0x8c   :  { %v912_v12 = vadd.f32 %v738_v10, %v83_v11 }
  0x8e   :  { %v110_v8 = vpop.f32.mrf.mxu1 }
  0x8f   :  { %v138_v9 = vadd.f32 %v905_v7, %v110_v8  ;;  %v113_v13 = vadd.f32 %v110_v8, %v912_v12 }
  0x91   :  { %140 = vrot.lane.b32.xlu0 %v138_v9, %s844_s3  ;;  %v715_v14 = vmul.f32 -1.442695, %v113_v13 }
  0x93   :  { %740 = vpow2.f32 %v715_v14 }
  0x99   :  { %v741_v15 = vpop.eup %740 }
  0x9a   :  { %v117_v16 = vadd.f32 1.0, %v741_v15 }
  0x9c   :  { %742 = vrcp.f32 %v117_v16  ;;  %v129_v22 = vand.u32 2147483648, %v117_v16  ;;  %vm123_vm2 = vweird.f32 %v117_v16  ;;  %v127_v23 = vand.u32 2147483647, %v117_v16 }
  0x9e   :  { %v130_v25 = vor.u32 1.1754944e-38, %v129_v22  ;;  %vm128_vm4 = vcmp.eq.f32.partialorder %v127_v23, 8.507059e+37 }
  0xa2   :  { %v743_v17 = vpop.eup %742 }
  0xa3   :  { %v119_v18 = vmul.f32 %v743_v17, %v117_v16  ;;  %vm124_vm1 = vweird.f32 %v743_v17 }
  0xa4   :  { %vm125_vm3 = vmor %vm123_vm2, %vm124_vm1 }
  0xa5   :  { %v120_v19 = vsub.f32 1.0, %v119_v18 }
  0xa7   :  { %v121_v20 = vmul.f32 %v743_v17, %v120_v19 }
  0xa9   :  { %v122_v21 = vadd.f32 %v743_v17, %v121_v20 }
  0xab   :  { %v126_v24 = vsel %vm125_vm3, %v743_v17, %v122_v21 }
  0xac   :  { %v131_v27 = vsel %vm128_vm4, %v130_v25, %v126_v24  ;;  %vm665_vm4 = vcmask 1042432  }
  0xad   :  { %v150_v32 = vsub.f32 1.0, %v131_v27  ;;  %v156_v34 = vmul.f32 0.0, %v131_v27 }
 0x103   :  { %v141_v26 = vpop.permute.xlu0 %140 }
 0x104   :  { %v143_v28 = vmul.f32 %v141_v26, %v131_v27 }
 0x106   :  { %145 = vrot.lane.b32.xlu1 %v143_v28, %s842_s16 }
 0x178   :  { %v146_v29 = vpop.permute.xlu1 %145 }
 0x179   :  { %v148_v30 = vadd.f32 %v146_v29, %v912_v12 }
 0x17b   :  { %744 = vtanh.f32 %v148_v30 }
 0x181   :  { %v745_v31 = vpop.eup %744 }
 0x182   :  { %152 = vrot.lane.b32.xlu1 %v745_v31, %s845_s2 }
 0x1f4   :  { %v153_v33 = vpop.permute.xlu1 %152 }
 0x1f5   :  { %v155_v35 = vmul.f32 %v153_v33, %v150_v32 }
 0x1f7   :  { %v918_v36 = vadd.f32 %v156_v34, %v155_v35 }
 0x1f9   :  { %159 = vrot.lane.b32.xlu2 %v918_v36, %s845_s2  ;;  %v225_v62 = vrot.slane %v918_v36, 7 }
 0x253   :  { %v160_v37 = vpop.permute.xlu2 %159 }
 0x254   :  { %716 = vmatmul.msk.f32.vlgmr.msra.gmra.mxu2 %vm89_vm5, %v160_v37 }
 0x2d7   :  { %v180_v38 = vpop.f32.mrf.mxu2 }
 0x2d8   :  { %v206_v39 = vadd.f32 %v180_v38, %v905_v7  ;;  %v184_v41 = vrot.slane %v180_v38, 7 }
 0x2da   :  { %v208_v40 = vrot.slane %v206_v39, 7  ;;  %v186_v42 = vadd.f32 %v184_v41, %v912_v12 }
 0x2dc   :  { %209 = vrot.lane.b32.xlu2 %v208_v40, %s844_s3  ;;  %v717_v43 = vmul.f32 -1.442695, %v186_v42 }
 0x2de   :  { %746 = vpow2.f32 %v717_v43 }
 0x2e4   :  { %v747_v44 = vpop.eup %746 }
 0x2e5   :  { %v190_v45 = vadd.f32 1.0, %v747_v44 }
 0x2e7   :  { %748 = vrcp.f32 %v190_v45  ;;  %v202_v51 = vand.u32 2147483648, %v190_v45  ;;  %vm196_vm7 = vweird.f32 %v190_v45  ;;  %v200_v52 = vand.u32 2147483647, %v190_v45 }
 0x2e9   :  { %v203_v54 = vor.u32 1.1754944e-38, %v202_v51  ;;  %vm201_vm9 = vcmp.eq.f32.partialorder %v200_v52, 8.507059e+37 }
 0x2ed   :  { %v749_v46 = vpop.eup %748 }
 0x2ee   :  { %v192_v47 = vmul.f32 %v749_v46, %v190_v45  ;;  %vm197_vm6 = vweird.f32 %v749_v46 }
 0x2ef   :  { %vm198_vm8 = vmor %vm196_vm7, %vm197_vm6 }
 0x2f0   :  { %v193_v48 = vsub.f32 1.0, %v192_v47 }
 0x2f2   :  { %v194_v49 = vmul.f32 %v749_v46, %v193_v48 }
 0x2f4   :  { %v195_v50 = vadd.f32 %v749_v46, %v194_v49 }
 0x2f6   :  { %v199_v53 = vsel %vm198_vm8, %v749_v46, %v195_v50 }
 0x2f7   :  { %v204_v56 = vsel %vm201_vm9, %v203_v54, %v199_v53 }
 0x2f8   :  { %v219_v61 = vsub.f32 1.0, %v204_v56  ;;  %v227_v1 = vmul.f32 %v225_v62, %v204_v56 }
 0x336   :  { %v210_v55 = vpop.permute.xlu2 %209 }
 0x337   :  { %v212_v57 = vmul.f32 %v210_v55, %v204_v56 }
 0x339   :  { %214 = vrot.lane.b32.xlu0 %v212_v57, %s842_s16 }
 0x3ab   :  { %v215_v58 = vpop.permute.xlu0 %214 }
 0x3ac   :  { %v217_v59 = vadd.f32 %v215_v58, %v912_v12 }
 0x3ae   :  { %750 = vtanh.f32 %v217_v59 }
 0x3b4   :  { %v751_v60 = vpop.eup %750 }
 0x3b5   :  { %221 = vrot.lane.b32.xlu1 %v751_v60, %s845_s2 }
 0x427   :  { %v222_v63 = vpop.permute.xlu1 %221 }
 0x428   :  { %v224_v0 = vmul.f32 %v222_v63, %v219_v61 }
 0x42a   :  { %v228_v2 = vadd.f32 %v227_v1, %v224_v0 }
 0x42c   :  { %v230_v3 = vrot.slane %v228_v2, 1  ;;  %v297_v31 = vrot.slane %v228_v2, 7  ;;  %v662_v37 = vsel %vm661_vm14, %v918_v36, %v228_v2 }
 0x42e   :  { %231 = vrot.lane.b32.xlu2 %v230_v3, %s845_s2 }
 0x488   :  { %v232_v4 = vpop.permute.xlu2 %231 }
 0x489   :  { %718 = vmatmul.msk.f32.vlgmr.msra.gmra.mxu3 %vm89_vm5, %v232_v4 }
 0x50c   :  { %v252_v5 = vpop.f32.mrf.mxu3 }
 0x50d   :  { %v278_v6 = vadd.f32 %v252_v5, %v905_v7  ;;  %v256_v9 = vrot.slane %v252_v5, 6 }
 0x50f   :  { %v280_v8 = vrot.slane %v278_v6, 6  ;;  %v258_v10 = vadd.f32 %v256_v9, %v912_v12 }
 0x511   :  { %281 = vrot.lane.b32.xlu0 %v280_v8, %s844_s3  ;;  %v719_v11 = vmul.f32 -1.442695, %v258_v10 }
 0x513   :  { %752 = vpow2.f32 %v719_v11 }
 0x519   :  { %v753_v13 = vpop.eup %752 }
 0x51a   :  { %v262_v14 = vadd.f32 1.0, %v753_v13 }
 0x51c   :  { %754 = vrcp.f32 %v262_v14  ;;  %v274_v20 = vand.u32 2147483648, %v262_v14  ;;  %vm268_vm11 = vweird.f32 %v262_v14  ;;  %v272_v21 = vand.u32 2147483647, %v262_v14 }
 0x51e   :  { %v275_v23 = vor.u32 1.1754944e-38, %v274_v20  ;;  %vm273_vm13 = vcmp.eq.f32.partialorder %v272_v21, 8.507059e+37 }
 0x522   :  { %v755_v15 = vpop.eup %754 }
 0x523   :  { %v264_v16 = vmul.f32 %v755_v15, %v262_v14  ;;  %vm269_vm10 = vweird.f32 %v755_v15 }
 0x524   :  { %vm270_vm12 = vmor %vm268_vm11, %vm269_vm10  ;;  %vm667_vm10 = vcmask 1043456  }
 0x525   :  { %v265_v17 = vsub.f32 1.0, %v264_v16 }
 0x527   :  { %v266_v18 = vmul.f32 %v755_v15, %v265_v17 }
 0x529   :  { %v267_v19 = vadd.f32 %v755_v15, %v266_v18 }
 0x52b   :  { %v271_v22 = vsel %vm270_vm12, %v755_v15, %v267_v19 }
 0x52c   :  { %v276_v25 = vsel %vm273_vm13, %v275_v23, %v271_v22 }
 0x52d   :  { %v291_v30 = vsub.f32 1.0, %v276_v25  ;;  %v299_v33 = vmul.f32 %v297_v31, %v276_v25 }
 0x583   :  { %v282_v24 = vpop.permute.xlu0 %281 }
 0x584   :  { %v284_v26 = vmul.f32 %v282_v24, %v276_v25 }
 0x586   :  { %286 = vrot.lane.b32.xlu1 %v284_v26, %s842_s16 }
 0x5f8   :  { %v287_v27 = vpop.permute.xlu1 %286 }
 0x5f9   :  { %v289_v28 = vadd.f32 %v287_v27, %v912_v12 }
 0x5fb   :  { %756 = vtanh.f32 %v289_v28 }
 0x601   :  { %v757_v29 = vpop.eup %756 }
 0x602   :  { %293 = vrot.lane.b32.xlu2 %v757_v29, %s845_s2 }
 0x65c   :  { %v294_v32 = vpop.permute.xlu2 %293 }
 0x65d   :  { %v296_v34 = vmul.f32 %v294_v32, %v291_v30 }
 0x65f   :  { %v300_v35 = vadd.f32 %v299_v33, %v296_v34 }
 0x661   :  { %v664_v38 = vsel %vm663_vm15, %v662_v37, %v300_v35  ;;  %v302_v39 = vrot.slane %v300_v35, 2  ;;  %v369_v0 = vrot.slane %v300_v35, 7  ;;  %vm669_vm15 = vcmask 1044480  }
 0x663   :  { %303 = vrot.lane.b32.xlu0 %v302_v39, %s845_s2 }
 0x6d5   :  { %v304_v40 = vpop.permute.xlu0 %303 }
 0x6d6   :  { %720 = vmatmul.msk.f32.vlgmr.msrb.gmra.mxu0 %vm89_vm5, %v304_v40 }
 0x753   :  { %v324_v41 = vpop.f32.mrf.mxu0 }
 0x754   :  { %v350_v42 = vadd.f32 %v324_v41, %v905_v7  ;;  %v328_v44 = vrot.slane %v324_v41, 5 }
 0x756   :  { %v352_v43 = vrot.slane %v350_v42, 5  ;;  %v330_v45 = vadd.f32 %v328_v44, %v912_v12 }
 0x758   :  { %353 = vrot.lane.b32.xlu1 %v352_v43, %s844_s3  ;;  %v721_v46 = vmul.f32 -1.442695, %v330_v45 }
 0x75a   :  { %758 = vpow2.f32 %v721_v46 }
 0x760   :  { %v759_v47 = vpop.eup %758 }
 0x761   :  { %v334_v36 = vadd.f32 1.0, %v759_v47 }
 0x763   :  { %760 = vrcp.f32 %v334_v36  ;;  %v346_v53 = vand.u32 2147483648, %v334_v36  ;;  %vm340_vm1 = vweird.f32 %v334_v36  ;;  %v344_v54 = vand.u32 2147483647, %v334_v36 }
 0x765   :  { %v347_v56 = vor.u32 1.1754944e-38, %v346_v53  ;;  %vm345_vm3 = vcmp.eq.f32.partialorder %v344_v54, 8.507059e+37 }
 0x769   :  { %v761_v48 = vpop.eup %760 }
 0x76a   :  { %v336_v49 = vmul.f32 %v761_v48, %v334_v36  ;;  %vm341_vm0 = vweird.f32 %v761_v48 }
 0x76b   :  { %vm342_vm2 = vmor %vm340_vm1, %vm341_vm0 }
 0x76c   :  { %v337_v50 = vsub.f32 1.0, %v336_v49 }
 0x76e   :  { %v338_v51 = vmul.f32 %v761_v48, %v337_v50 }
 0x770   :  { %v339_v52 = vadd.f32 %v761_v48, %v338_v51 }
 0x772   :  { %v343_v55 = vsel %vm342_vm2, %v761_v48, %v339_v52 }
 0x773   :  { %v348_v58 = vsel %vm345_vm3, %v347_v56, %v343_v55 }
 0x774   :  { %v363_v63 = vsub.f32 1.0, %v348_v58  ;;  %v371_v2 = vmul.f32 %v369_v0, %v348_v58 }
 0x7ca   :  { %v354_v57 = vpop.permute.xlu1 %353 }
 0x7cb   :  { %v356_v59 = vmul.f32 %v354_v57, %v348_v58 }
 0x7cd   :  { %358 = vrot.lane.b32.xlu2 %v356_v59, %s842_s16 }
 0x827   :  { %v359_v60 = vpop.permute.xlu2 %358 }
 0x828   :  { %v361_v61 = vadd.f32 %v359_v60, %v912_v12 }
 0x82a   :  { %762 = vtanh.f32 %v361_v61 }
 0x830   :  { %v763_v62 = vpop.eup %762 }
 0x831   :  { %365 = vrot.lane.b32.xlu0 %v763_v62, %s845_s2 }
 0x8a3   :  { %v366_v1 = vpop.permute.xlu0 %365 }
 0x8a4   :  { %v368_v3 = vmul.f32 %v366_v1, %v363_v63 }
 0x8a6   :  { %v372_v4 = vadd.f32 %v371_v2, %v368_v3 }
 0x8a8   :  { %v666_v5 = vsel %vm665_vm4, %v664_v38, %v372_v4  ;;  %v374_v6 = vrot.slane %v372_v4, 3  ;;  %v441_v27 = vrot.slane %v372_v4, 7  ;;  %vm671_vm4 = vcmask 1045504  }
 0x8aa   :  { %375 = vrot.lane.b32.xlu1 %v374_v6, %s845_s2 }
 0x91c   :  { %v376_v8 = vpop.permute.xlu1 %375 }
 0x91d   :  { %722 = vmatmul.msk.f32.vlgmr.msrb.gmra.mxu1 %vm89_vm5, %v376_v8 }
 0x99a   :  { %v396_v9 = vpop.f32.mrf.mxu1 }
 0x99b   :  { %v400_v10 = vrot.slane %v396_v9, 4  ;;  %v422_v11 = vadd.f32 %v396_v9, %v905_v7 }
 0x99d   :  { %v402_v13 = vadd.f32 %v400_v10, %v912_v12  ;;  %v424_v14 = vrot.slane %v422_v11, 4 }
 0x99f   :  { %v723_v15 = vmul.f32 -1.442695, %v402_v13  ;;  %425 = vrot.lane.b32.xlu2 %v424_v14, %s844_s3 }
 0x9a1   :  { %764 = vpow2.f32 %v723_v15 }
 0x9a7   :  { %v765_v16 = vpop.eup %764 }
 0x9a8   :  { %v406_v17 = vadd.f32 1.0, %v765_v16 }
 0x9aa   :  { %766 = vrcp.f32 %v406_v17  ;;  %v418_v21 = vand.u32 2147483648, %v406_v17  ;;  %v416_v23 = vand.u32 2147483647, %v406_v17  ;;  %vm412_vm7 = vweird.f32 %v406_v17 }
 0x9ac   :  { %v419_v25 = vor.u32 1.1754944e-38, %v418_v21  ;;  %vm417_vm9 = vcmp.eq.f32.partialorder %v416_v23, 8.507059e+37 }
 0x9b0   :  { %v767_v18 = vpop.eup %766 }
 0x9b1   :  { %v408_v19 = vmul.f32 %v767_v18, %v406_v17  ;;  %vm413_vm6 = vweird.f32 %v767_v18 }
 0x9b2   :  { %vm414_vm8 = vmor %vm412_vm7, %vm413_vm6 }
 0x9b3   :  { %v409_v20 = vsub.f32 1.0, %v408_v19 }
 0x9b5   :  { %v410_v22 = vmul.f32 %v767_v18, %v409_v20 }
 0x9b7   :  { %v411_v24 = vadd.f32 %v767_v18, %v410_v22 }
 0x9b9   :  { %v415_v26 = vsel %vm414_vm8, %v767_v18, %v411_v24 }
 0x9ba   :  { %v420_v28 = vsel %vm417_vm9, %v419_v25, %v415_v26 }
 0x9bb   :  { %v443_v29 = vmul.f32 %v441_v27, %v420_v28  ;;  %v435_v35 = vsub.f32 1.0, %v420_v28 }
 0x9f9   :  { %v426_v30 = vpop.permute.xlu2 %425 }
 0x9fa   :  { %v428_v31 = vmul.f32 %v426_v30, %v420_v28 }
 0x9fc   :  { %430 = vrot.lane.b32.xlu0 %v428_v31, %s842_s16 }
 0xa6e   :  { %v431_v32 = vpop.permute.xlu0 %430 }
 0xa6f   :  { %v433_v33 = vadd.f32 %v431_v32, %v912_v12 }
 0xa71   :  { %768 = vtanh.f32 %v433_v33 }
 0xa77   :  { %v769_v34 = vpop.eup %768 }
 0xa78   :  { %437 = vrot.lane.b32.xlu1 %v769_v34, %s845_s2 }
 0xaea   :  { %v438_v37 = vpop.permute.xlu1 %437 }
 0xaeb   :  { %v440_v38 = vmul.f32 %v438_v37, %v435_v35 }
 0xaed   :  { %v444_v39 = vadd.f32 %v443_v29, %v440_v38 }
 0xaef   :  { %v668_v40 = vsel %vm667_vm10, %v666_v5, %v444_v39  ;;  %v446_v41 = vrot.slane %v444_v39, 4  ;;  %v513_v2 = vrot.slane %v444_v39, 7  ;;  %vm673_vm10 = vcmask 1046528  }
 0xaf1   :  { %447 = vrot.lane.b32.xlu2 %v446_v41, %s845_s2 }
 0xb4b   :  { %v448_v42 = vpop.permute.xlu2 %447 }
 0xb4c   :  { %724 = vmatmul.msk.f32.vlgmr.msrb.gmra.mxu2 %vm89_vm5, %v448_v42 }
 0xbcf   :  { %v468_v43 = vpop.f32.mrf.mxu2 }
 0xbd0   :  { %v494_v44 = vadd.f32 %v468_v43, %v905_v7  ;;  %v472_v46 = vrot.slane %v468_v43, 3 }
 0xbd2   :  { %v496_v45 = vrot.slane %v494_v44, 3  ;;  %v474_v47 = vadd.f32 %v472_v46, %v912_v12 }
 0xbd4   :  { %497 = vrot.lane.b32.xlu0 %v496_v45, %s844_s3  ;;  %v725_v36 = vmul.f32 -1.442695, %v474_v47 }
 0xbd6   :  { %770 = vpow2.f32 %v725_v36 }
 0xbdc   :  { %v771_v48 = vpop.eup %770 }
 0xbdd   :  { %v478_v49 = vadd.f32 1.0, %v771_v48 }
 0xbdf   :  { %772 = vrcp.f32 %v478_v49  ;;  %v490_v55 = vand.u32 2147483648, %v478_v49  ;;  %vm484_vm12 = vweird.f32 %v478_v49  ;;  %v488_v56 = vand.u32 2147483647, %v478_v49 }
 0xbe1   :  { %v491_v58 = vor.u32 1.1754944e-38, %v490_v55  ;;  %vm489_vm14 = vcmp.eq.f32.partialorder %v488_v56, 8.507059e+37 }
 0xbe5   :  { %v773_v50 = vpop.eup %772 }
 0xbe6   :  { %v480_v51 = vmul.f32 %v773_v50, %v478_v49  ;;  %vm485_vm11 = vweird.f32 %v773_v50 }
 0xbe7   :  { %vm486_vm13 = vmor %vm484_vm12, %vm485_vm11  ;;  %vm706_vm11 = vcmask 7168  }
 0xbe8   :  { %v481_v52 = vsub.f32 1.0, %v480_v51 }
 0xbea   :  { %v482_v53 = vmul.f32 %v773_v50, %v481_v52 }
 0xbec   :  { %v483_v54 = vadd.f32 %v773_v50, %v482_v53 }
 0xbee   :  { %v487_v57 = vsel %vm486_vm13, %v773_v50, %v483_v54 }
 0xbef   :  { %v492_v60 = vsel %vm489_vm14, %v491_v58, %v487_v57 }
 0xbf0   :  { %v507_v1 = vsub.f32 1.0, %v492_v60  ;;  %v515_v4 = vmul.f32 %v513_v2, %v492_v60 }
 0xc46   :  { %v498_v59 = vpop.permute.xlu0 %497 }
 0xc47   :  { %v500_v61 = vmul.f32 %v498_v59, %v492_v60 }
 0xc49   :  { %502 = vrot.lane.b32.xlu1 %v500_v61, %s842_s16 }
 0xcbb   :  { %v503_v62 = vpop.permute.xlu1 %502 }
 0xcbc   :  { %v505_v63 = vadd.f32 %v503_v62, %v912_v12 }
 0xcbe   :  { %774 = vtanh.f32 %v505_v63 }
 0xcc4   :  { %v775_v0 = vpop.eup %774 }
 0xcc5   :  { %509 = vrot.lane.b32.xlu2 %v775_v0, %s845_s2 }
 0xd1f   :  { %v510_v3 = vpop.permute.xlu2 %509 }
 0xd20   :  { %v512_v5 = vmul.f32 %v510_v3, %v507_v1 }
 0xd22   :  { %v516_v6 = vadd.f32 %v515_v4, %v512_v5  ;;  %v676_v4 = vld [vmem:[%s995_s5 + $0x8] sm:$0xff]  ;;  %v675_v5 = vld [vmem:[%s995_s5] sm:$0xff] }
 0xd23   :  { %700 = vmatpush.msra.mxu1 %v676_v4 }
 0xd24   :  { %v518_v8 = vrot.slane %v516_v6, 5  ;;  %v670_v9 = vsel %vm669_vm15, %v668_v40, %v516_v6  ;;  %v585_v37 = vrot.slane %v516_v6, 7 }
 0xd25   :  { %701 = vmatpush.msra.mxu1 %v675_v5 }
 0xd26   :  { %519 = vrot.lane.b32.xlu0 %v518_v8, %s845_s2 }
 0xd98   :  { %v520_v10 = vpop.permute.xlu0 %519 }
 0xd99   :  { %726 = vmatmul.msk.f32.vlgmr.msrb.gmra.mxu3 %vm89_vm5, %v520_v10 }
 0xe1c   :  { %v540_v11 = vpop.f32.mrf.mxu3 }
 0xe1d   :  { %v566_v13 = vadd.f32 %v540_v11, %v905_v7  ;;  %v544_v15 = vrot.slane %v540_v11, 2 }
 0xe1f   :  { %v568_v14 = vrot.slane %v566_v13, 2  ;;  %v546_v16 = vadd.f32 %v544_v15, %v912_v12  ;;  %v739_v13 = vld [vmem:[#allocation2] ss:$0 sm:$0xff] }
 0xe21   :  { %569 = vrot.lane.b32.xlu1 %v568_v14, %s844_s3  ;;  %v727_v17 = vmul.f32 -1.442695, %v546_v16 }
 0xe23   :  { %776 = vpow2.f32 %v727_v17 }
 0xe29   :  { %v777_v18 = vpop.eup %776 }
 0xe2a   :  { %v550_v19 = vadd.f32 1.0, %v777_v18 }
 0xe2c   :  { %778 = vrcp.f32 %v550_v19  ;;  %v562_v25 = vand.u32 2147483648, %v550_v19  ;;  %vm556_vm1 = vweird.f32 %v550_v19  ;;  %v560_v26 = vand.u32 2147483647, %v550_v19 }
 0xe2e   :  { %v563_v28 = vor.u32 1.1754944e-38, %v562_v25  ;;  %vm561_vm3 = vcmp.eq.f32.partialorder %v560_v26, 8.507059e+37 }
 0xe32   :  { %v779_v20 = vpop.eup %778 }
 0xe33   :  { %v552_v21 = vmul.f32 %v779_v20, %v550_v19  ;;  %vm557_vm0 = vweird.f32 %v779_v20 }
 0xe34   :  { %vm558_vm2 = vmor %vm556_vm1, %vm557_vm0 }
 0xe35   :  { %v553_v22 = vsub.f32 1.0, %v552_v21 }
 0xe37   :  { %v554_v23 = vmul.f32 %v779_v20, %v553_v22 }
 0xe39   :  { %v555_v24 = vadd.f32 %v779_v20, %v554_v23 }
 0xe3b   :  { %v559_v27 = vsel %vm558_vm2, %v779_v20, %v555_v24 }
 0xe3c   :  { %v564_v30 = vsel %vm561_vm3, %v563_v28, %v559_v27 }
 0xe3d   :  { %v579_v35 = vsub.f32 1.0, %v564_v30  ;;  %v587_v39 = vmul.f32 %v585_v37, %v564_v30 }
 0xe93   :  { %v570_v29 = vpop.permute.xlu1 %569 }
 0xe94   :  { %v572_v31 = vmul.f32 %v570_v29, %v564_v30 }
 0xe96   :  { %574 = vrot.lane.b32.xlu2 %v572_v31, %s842_s16 }
 0xef0   :  { %v575_v32 = vpop.permute.xlu2 %574 }
 0xef1   :  { %v577_v33 = vadd.f32 %v575_v32, %v912_v12 }
 0xef3   :  { %780 = vtanh.f32 %v577_v33 }
 0xef9   :  { %v781_v34 = vpop.eup %780 }
 0xefa   :  { %581 = vrot.lane.b32.xlu0 %v781_v34, %s845_s2 }
 0xf6c   :  { %v582_v38 = vpop.permute.xlu0 %581 }
 0xf6d   :  { %v584_v40 = vmul.f32 %v582_v38, %v579_v35 }
 0xf6f   :  { %v588_v41 = vadd.f32 %v587_v39, %v584_v40 }
 0xf71   :  { %v590_v42 = vrot.slane %v588_v41, 6  ;;  %v672_v43 = vsel %vm671_vm4, %v670_v9, %v588_v41  ;;  %v657_v60 = vrot.slane %v588_v41, 7 }
 0xf73   :  { %591 = vrot.lane.b32.xlu1 %v590_v42, %s845_s2 }
 0xfe5   :  { %v592_v44 = vpop.permute.xlu1 %591 }
 0xfe6   :  { %728 = vmatmul.msk.f32.vlgmr.msra.gmra.mxu0 %vm89_vm5, %v592_v44 }
0x1063   :  { %v612_v45 = vpop.f32.mrf.mxu0 }
0x1064   :  { %v616_v46 = vrot.slane %v612_v45, 1  ;;  %v638_v47 = vadd.f32 %v612_v45, %v905_v7 }
0x1066   :  { %v618_v36 = vadd.f32 %v616_v46, %v912_v12  ;;  %v640_v48 = vrot.slane %v638_v47, 1 }
0x1068   :  { %v729_v49 = vmul.f32 -1.442695, %v618_v36  ;;  %641 = vrot.lane.b32.xlu2 %v640_v48, %s844_s3 }
0x106a   :  { %782 = vpow2.f32 %v729_v49 }
0x1070   :  { %v783_v50 = vpop.eup %782 }
0x1071   :  { %v622_v51 = vadd.f32 1.0, %v783_v50 }
0x1073   :  { %784 = vrcp.f32 %v622_v51  ;;  %v634_v55 = vand.u32 2147483648, %v622_v51  ;;  %v632_v57 = vand.u32 2147483647, %v622_v51  ;;  %vm628_vm7 = vweird.f32 %v622_v51 }
0x1075   :  { %v635_v7 = vor.u32 1.1754944e-38, %v634_v55  ;;  %vm633_vm9 = vcmp.eq.f32.partialorder %v632_v57, 8.507059e+37 }
0x1079   :  { %v785_v52 = vpop.eup %784 }
0x107a   :  { %v624_v53 = vmul.f32 %v785_v52, %v622_v51  ;;  %vm629_vm6 = vweird.f32 %v785_v52 }
0x107b   :  { %vm630_vm8 = vmor %vm628_vm7, %vm629_vm6 }
0x107c   :  { %v625_v54 = vsub.f32 1.0, %v624_v53 }
0x107e   :  { %v626_v56 = vmul.f32 %v785_v52, %v625_v54 }
0x1080   :  { %v627_v58 = vadd.f32 %v785_v52, %v626_v56 }
0x1082   :  { %v631_v59 = vsel %vm630_vm8, %v785_v52, %v627_v58 }
0x1083   :  { %v636_v61 = vsel %vm633_vm9, %v635_v7, %v631_v59 }
0x1084   :  { %v659_v62 = vmul.f32 %v657_v60, %v636_v61  ;;  %v651_v6 = vsub.f32 1.0, %v636_v61 }
0x10c2   :  { %v642_v63 = vpop.permute.xlu2 %641 }
0x10c3   :  { %v644_v0 = vmul.f32 %v642_v63, %v636_v61 }
0x10c5   :  { %646 = vrot.lane.b32.xlu0 %v644_v0, %s842_s16 }
0x1137   :  { %v647_v1 = vpop.permute.xlu0 %646 }
0x1138   :  { %v649_v2 = vadd.f32 %v647_v1, %v912_v12 }
0x113a   :  { %786 = vtanh.f32 %v649_v2 }
0x1140   :  { %v787_v3 = vpop.eup %786 }
0x1141   :  { %653 = vrot.lane.b32.xlu1 %v787_v3, %s845_s2 }
0x11b3   :  { %v654_v8 = vpop.permute.xlu1 %653 }
0x11b4   :  { %v656_v9 = vmul.f32 %v654_v8, %v651_v6 }
0x11b6   :  { %v660_v10 = vadd.f32 %v659_v62, %v656_v9 }
0x11b8   :  { %v674_v12 = vsel %vm673_vm10, %v672_v43, %v660_v10 }
0x11b9   :  { %682 = vrot.lane.b32.xlu2 %v674_v12, %s845_s2 }
0x1213   :  { %v683_v11 = vpop.permute.xlu2 %682 }
0x1214   :  { %730 = vmatmul.msk.f32.vlgmr.msra.gmra.mxu1 %vm89_vm5, %v683_v11 }
0x1291   :  { %v703_v14 = vpop.f32.mrf.mxu1 }
0x1292   :  { %v704_v15 = vadd.f32 %v739_v13, %v703_v14 }
0x1294   :  { %707 = vst.msk [vmem:[%s997_s7] sm:$0xff] %vm706_vm11, %v704_v15 }
0x1295   :  { %712 = vsyncpa [#allocation4], 1 }
0x1296   :  { %713 = vsyncpa [#allocation6], 1 }

</bundles_post_ra>
